<compile_context>
chip_gen: v7x
topology: tpu7x:2x2x1
jax: 0.10.0
libtpu: 0.0.40
codegen_flags: <defaults>
</compile_context>

<pallas_src>
import jax
import jax.numpy as jnp
from jax.experimental import pallas as pl
from jax.experimental.pallas import tpu as pltpu


# ---------------- Pallas kernels ----------------

def _elu(h):
    # exp only on the non-positive branch -> no inf generated on the dead lane.
    return jnp.where(h > 0, h, jnp.exp(jnp.minimum(h, 0.0)) - 1.0)


def _linear_elu_kernel(x_ref, w_ref, b_ref, out_ref):
    # bf16 cast on the VPU right before the MXU push; f32 accumulate; bias + ELU epilogue.
    x = x_ref[...].astype(jnp.bfloat16)
    h = jnp.dot(x, w_ref[...], preferred_element_type=jnp.float32) + b_ref[...]
    out_ref[...] = _elu(h).astype(out_ref.dtype)


def _project_kernel(z_ref, w1_ref, b1_ref, w2_ref, b2_ref, out_ref):
    # F.elu(fc1(z)) -> fc2, fused: intermediate never leaves VMEM.
    z = z_ref[...].astype(jnp.bfloat16)
    h = jnp.dot(z, w1_ref[...], preferred_element_type=jnp.float32) + b1_ref[...]
    h = _elu(h)
    out = jnp.dot(h.astype(jnp.bfloat16), w2_ref[...],
                  preferred_element_type=jnp.float32) + b2_ref[...]
    out_ref[...] = out.astype(out_ref.dtype)


def _mask_pair_kernel(l_ref, keep1_ref, keep2_ref, o1_ref, o2_ref):
    # One L column-tile in, both masked variants out.  keep* are [1, col_tile]
    # per-column 0/1 vectors (broadcast over rows on the VPU).
    l = l_ref[...]
    o1_ref[...] = l * keep1_ref[...]
    o2_ref[...] = l * keep2_ref[...]


# ---------------- small helpers ----------------

def _round_up(x, m):
    return ((x + m - 1) // m) * m


def _pick_row_tile(n_rows, max_tile=512):
    # largest multiple-of-8 tile <= max_tile; rows are padded to a multiple of it.
    return min(max_tile, _round_up(n_rows, 8))


def _pick_col_tile(n_cols, max_tile=512):
    for cand in (max_tile, 256, 128):
        if cand <= n_cols and n_cols % cand == 0:
            return cand
    return n_cols  # full-axis block is always legal


def _pad_rows(x, padded_rows):
    pad = padded_rows - x.shape[0]
    if pad == 0:
        return x
    return jnp.pad(x, ((0, pad), (0, 0)))


_MOSAIC_PARAMS = pltpu.CompilerParams(
    dimension_semantics=("parallel",),
    vmem_limit_bytes=32 * 1024 * 1024,  # explicit budget, safe on v7x's scoped VMEM
)


def _linear_elu(x, w_bf16, b_f32, *, max_tile=512):
    rows, feat = x.shape
    hidden = w_bf16.shape[1]
    tile = _pick_row_tile(rows, max_tile)
    padded = _round_up(rows, tile)
    x_p = _pad_rows(x, padded)
    out = pl.pallas_call(
        _linear_elu_kernel,
        grid=(padded // tile,),
        in_specs=[pl.BlockSpec((tile, feat), lambda i: (i, 0)),
                  pl.BlockSpec((feat, hidden), lambda i: (0, 0)),
                  pl.BlockSpec((1, hidden), lambda i: (0, 0))],
        out_specs=pl.BlockSpec((tile, hidden), lambda i: (i, 0)),
        out_shape=jax.ShapeDtypeStruct((padded, hidden), jnp.float32),
        compiler_params=_MOSAIC_PARAMS,
    )(x_p, w_bf16, b_f32)
    return out if padded == rows else out[:rows]


# ---------------- random_mask (torch semantics), fused pair ----------------

def random_mask_pair(key, L, p_first, p_second):
    """Two independent column-drop masks of L (drop probs p_first / p_second),
    produced by a single column-tiled pallas_call.  Per-column uniforms are drawn
    with jax.random in the wrapper (tiny [1, n_cols] vectors), matching torch's
    `uniform_(0,1) < drop_prob` column-drop semantics exactly."""
    n_rows, n_cols = L.shape
    k1, k2 = jax.random.split(key)
    keep1 = (jax.random.uniform(k1, (1, n_cols)) >= p_first).astype(L.dtype)
    keep2 = (jax.random.uniform(k2, (1, n_cols)) >= p_second).astype(L.dtype)

    col_tile = _pick_col_tile(n_cols)
    out_shape = (jax.ShapeDtypeStruct(L.shape, L.dtype),
                 jax.ShapeDtypeStruct(L.shape, L.dtype))
    return pl.pallas_call(
        _mask_pair_kernel,
        grid=(n_cols // col_tile,),
        in_specs=[pl.BlockSpec((n_rows, col_tile), lambda j: (0, j)),
                  pl.BlockSpec((1, col_tile), lambda j: (0, j)),
                  pl.BlockSpec((1, col_tile), lambda j: (0, j))],
        out_specs=[pl.BlockSpec((n_rows, col_tile), lambda j: (0, j)),
                   pl.BlockSpec((n_rows, col_tile), lambda j: (0, j))],
        out_shape=out_shape,
        compiler_params=_MOSAIC_PARAMS,
    )(L, keep1, keep2)


# ---------------- parameter init (torch.nn.Linear default) ----------------

def _init_linear(key, in_dim, out_dim):
    kw, kb = jax.random.split(key)
    bound = 1.0 / float(in_dim) ** 0.5
    w = jax.random.uniform(kw, (in_dim, out_dim), minval=-bound, maxval=bound,
                           dtype=jnp.float32)
    b = jax.random.uniform(kb, (1, out_dim), minval=-bound, maxval=bound,
                           dtype=jnp.float32)
    return w, b


# ---------------- stand-in for the injected GNN encoder ----------------

class SimpleGraphEncoder:
    """Dense layer + ELU, run in a Pallas kernel, as a stand-in for the injected encoder.
    # TODO(synk): the real `encoder` passed into Encoder.__init__ is an external GNN
    # whose message passing over edge_index / L0 / L1 is not defined in the reference.
    """

    def __init__(self, key, in_dim, hidden_dim):
        self.w, self.b = _init_linear(key, in_dim, hidden_dim)
        self.w_bf16 = self.w.astype(jnp.bfloat16)   # cast once, not per call

    def __call__(self, x, edge_index, org_edge_index, L0, L1, edge_weight=None):
        return _linear_elu(x, self.w_bf16, self.b)

    def encode_batched(self, xs, edge_indices, org_edge_index, L0s, L1s, edge_weights):
        # TODO(synk): a real GNN would need per-view edge_index/L0/L1; the dense
        # stand-in only consumes node features.
        if all(xi is xs[0] for xi in xs[1:]):
            # identity augmentors -> all views alias the same array: one matmul.
            emb = _linear_elu(xs[0], self.w_bf16, self.b)
            return emb, emb, emb
        # distinct views: per-view calls (no concat => no extra HBM pass over activations)
        return tuple(_linear_elu(xi, self.w_bf16, self.b) for xi in xs)


# ---------------- Encoder module ----------------

class Encoder:
    def __init__(self, encoder, augmentor, hidden_dim, proj_dim, key):
        self.encoder = encoder
        self.augmentor = augmentor
        k1, k2 = jax.random.split(key)
        self.w1, self.b1 = _init_linear(k1, hidden_dim, proj_dim)   # fc1
        self.w2, self.b2 = _init_linear(k2, proj_dim, hidden_dim)   # fc2
        self.w1_bf16 = self.w1.astype(jnp.bfloat16)
        self.w2_bf16 = self.w2.astype(jnp.bfloat16)

    def forward(self, key, x, edge_index, L0, L1, edge_weight=None):
        aug1, aug2 = self.augmentor
        # TODO(synk): aug1/aug2 are externally injected graph augmentors (undefined here);
        # identity augmentors are supplied in __main__.
        x1, edge_index1, edge_weight1 = aug1(x, edge_index, edge_weight)
        x2, edge_index2, edge_weight2 = aug2(x, edge_index, edge_weight)
        org_edge_index = edge_index

        k0, k1 = jax.random.split(key)
        L0_1, L0_2 = random_mask_pair(k0, L0, 0.1, 0.2)   # 2 fused calls replace 4
        L1_1, L1_2 = random_mask_pair(k1, L1, 0.2, 0.1)

        if hasattr(self.encoder, "encode_batched"):
            emb, emb1, emb2 = self.encoder.encode_batched(
                (x, x1, x2),
                (edge_index, edge_index1, edge_index2),
                org_edge_index,
                (L0, L0_1, L0_2),
                (L1, L1_1, L1_2),
                (edge_weight, edge_weight1, edge_weight2))
        else:
            emb = self.encoder(x, edge_index, org_edge_index, L0, L1, edge_weight)
            emb1 = self.encoder(x1, edge_index1, org_edge_index, L0_1, L1_1, edge_weight1)
            emb2 = self.encoder(x2, edge_index2, org_edge_index, L0_2, L1_2, edge_weight2)
        return emb, emb1, emb2, L0_1, L0_2, L1_1, L1_2

    def project(self, z):
        rows, hidden = z.shape
        proj = self.w1_bf16.shape[1]
        tile = _pick_row_tile(rows)
        padded = _round_up(rows, tile)
        z_p = _pad_rows(z, padded)
        out = pl.pallas_call(
            _project_kernel,
            grid=(padded // tile,),
            in_specs=[pl.BlockSpec((tile, hidden), lambda i: (i, 0)),
                      pl.BlockSpec((hidden, proj), lambda i: (0, 0)),
                      pl.BlockSpec((1, proj), lambda i: (0, 0)),
                      pl.BlockSpec((proj, hidden), lambda i: (0, 0)),
                      pl.BlockSpec((1, hidden), lambda i: (0, 0))],
            out_specs=pl.BlockSpec((tile, hidden), lambda i: (i, 0)),
            out_shape=jax.ShapeDtypeStruct((padded, hidden), jnp.float32),
            compiler_params=_MOSAIC_PARAMS,
        )(z_p, self.w1_bf16, self.b1, self.w2_bf16, self.b2)
        return out if padded == rows else out[:rows]


# ---------------- demo ----------------

if __name__ == "__main__":
    key = jax.random.PRNGKey(0)
    k_x, k_l0, k_l1, k_enc, k_fc, k_fwd = jax.random.split(key, 6)

    # lane-dense small shapes: feature/hidden/proj dims and edge counts are
    # multiples of 128 so all stores are unmasked full-lane writes.
    N, feat_dim = 16, 128            # nodes, input feature dim
    hidden_dim, proj_dim = 128, 128
    n_edges0, n_edges1 = 256, 128    # columns of L0 / L1

    x = jax.random.normal(k_x, (N, feat_dim), dtype=jnp.float32)
    L0 = jax.random.normal(k_l0, (N, n_edges0), dtype=jnp.float32)
    L1 = jax.random.normal(k_l1, (N, n_edges1), dtype=jnp.float32)
    edge_index = jnp.stack([jnp.arange(N, dtype=jnp.int32),
                            (jnp.arange(N, dtype=jnp.int32) + 1) % N])

    identity_aug = lambda x_, ei_, ew_: (x_, ei_, ew_)
    gnn = SimpleGraphEncoder(k_enc, feat_dim, hidden_dim)
    model = Encoder(gnn, (identity_aug, identity_aug), hidden_dim, proj_dim, k_fc)

    emb, emb1, emb2, L0_1, L0_2, L1_1, L1_2 = model.forward(k_fwd, x, edge_index, L0, L1)
    proj = model.project(emb)

    jax.block_until_ready((emb, emb1, emb2, L0_1, L0_2, L1_1, L1_2, proj))

    assert emb.shape == (N, hidden_dim) and emb1.shape == (N, hidden_dim)
    assert emb2.shape == (N, hidden_dim) and proj.shape == (N, hidden_dim)
    assert L0_1.shape == L0.shape and L0_2.shape == L0.shape
    assert L1_1.shape == L1.shape and L1_2.shape == L1.shape
    # masked matrices: every entry is either zeroed (dropped column) or equal to original
    assert bool(jnp.all((L0_1 == 0.0) | (L0_1 == L0)))
    assert bool(jnp.all((L0_2 == 0.0) | (L0_2 == L0)))
    assert bool(jnp.all((L1_1 == 0.0) | (L1_1 == L1)))
    assert bool(jnp.all((L1_2 == 0.0) | (L1_2 == L1)))
    # dropped columns are dropped for ALL rows (column-consistent masking)
    col_zero = jnp.all(L0_1 == 0.0, axis=0)
    col_keep = jnp.all(L0_1 == L0, axis=0)
    assert bool(jnp.all(col_zero | col_keep))
    assert bool(jnp.all(jnp.isfinite(emb))) and bool(jnp.all(jnp.isfinite(proj)))
    print("KERNEL_OK")
</pallas_src>

<mosaic_0001>
module attributes {stable_mosaic.version = 11 : i64} {
  func.func @_mask_pair_kernel(%arg0: i32, %arg1: memref<16x256xf32, #tpu.memory_space<vmem>>, %arg2: memref<1x256xf32, #tpu.memory_space<vmem>>, %arg3: memref<1x256xf32, #tpu.memory_space<vmem>>, %arg4: memref<16x256xf32, #tpu.memory_space<vmem>>, %arg5: memref<16x256xf32, #tpu.memory_space<vmem>>) attributes {dimension_semantics = [#tpu.dimension_semantics<parallel>], iteration_bounds = array<i64: 1>, scalar_prefetch = 0 : i64, scratch_operands = 0 : i64, tpu.core_type = #tpu.core_type<tc>, window_params = [{transform_indices = @transform_0, window_bounds = array<i64: 16, 256>}, {transform_indices = @transform_1, window_bounds = array<i64: 1, 256>}, {transform_indices = @transform_2, window_bounds = array<i64: 1, 256>}, {transform_indices = @transform_3, window_bounds = array<i64: 16, 256>}, {transform_indices = @transform_4, window_bounds = array<i64: 16, 256>}]} {
    %c0 = arith.constant 0 : index
    %c0_0 = arith.constant 0 : index
    %0 = vector.load %arg1[%c0, %c0_0] : memref<16x256xf32, #tpu.memory_space<vmem>>, vector<16x256xf32>
    %c0_1 = arith.constant 0 : index
    %c0_2 = arith.constant 0 : index
    %1 = vector.load %arg2[%c0_1, %c0_2] : memref<1x256xf32, #tpu.memory_space<vmem>>, vector<1x256xf32>
    %2 = vector.broadcast %1 : vector<1x256xf32> to vector<16x256xf32>
    %3 = arith.mulf %0, %2 : vector<16x256xf32>
    %c0_3 = arith.constant 0 : index
    %c0_4 = arith.constant 0 : index
    %4 = vector.load %arg4[%c0_3, %c0_4] : memref<16x256xf32, #tpu.memory_space<vmem>>, vector<16x256xf32>
    tpu.vector_store %arg4[%c0_3, %c0_4], %3 {strides = array<i32>} : memref<16x256xf32, #tpu.memory_space<vmem>>, vector<16x256xf32>,
    %c0_5 = arith.constant 0 : index
    %c0_6 = arith.constant 0 : index
    %5 = vector.load %arg3[%c0_5, %c0_6] : memref<1x256xf32, #tpu.memory_space<vmem>>, vector<1x256xf32>
    %6 = vector.broadcast %5 : vector<1x256xf32> to vector<16x256xf32>
    %7 = arith.mulf %0, %6 : vector<16x256xf32>
    %c0_7 = arith.constant 0 : index
    %c0_8 = arith.constant 0 : index
    %8 = vector.load %arg5[%c0_7, %c0_8] : memref<16x256xf32, #tpu.memory_space<vmem>>, vector<16x256xf32>
    tpu.vector_store %arg5[%c0_7, %c0_8], %7 {strides = array<i32>} : memref<16x256xf32, #tpu.memory_space<vmem>>, vector<16x256xf32>,
    return
  }
  func.func @transform_0(%arg0: i32) -> (i32, i32) {
    %c0_i32 = arith.constant 0 : i32
    %c0_i32_0 = arith.constant 0 : i32
    return %c0_i32, %arg0 : i32, i32
  }
  func.func @transform_1(%arg0: i32) -> (i32, i32) {
    %c0_i32 = arith.constant 0 : i32
    %c0_i32_0 = arith.constant 0 : i32
    return %c0_i32, %arg0 : i32, i32
  }
  func.func @transform_2(%arg0: i32) -> (i32, i32) {
    %c0_i32 = arith.constant 0 : i32
    %c0_i32_0 = arith.constant 0 : i32
    return %c0_i32, %arg0 : i32, i32
  }
  func.func @transform_3(%arg0: i32) -> (i32, i32) {
    %c0_i32 = arith.constant 0 : i32
    %c0_i32_0 = arith.constant 0 : i32
    return %c0_i32, %arg0 : i32, i32
  }
  func.func @transform_4(%arg0: i32) -> (i32, i32) {
    %c0_i32 = arith.constant 0 : i32
    %c0_i32_0 = arith.constant 0 : i32
    return %c0_i32, %arg0 : i32, i32
  }
}

</mosaic_0001>

<bundles_post_ra>
// kernel: tpu_custom_call.1
= control target key start
LH: loop header
LB: loop body
LE: loop exit
PB: predicated region body
PF: predicated region fallthrough
CT: control target
= control target key end

     0   :  { %10 = vsyncpa [#allocation3], 0  ;;  %s281_s0 = inlined_call_operand.hbm [shape: f32[16,256], index: 0, kind: input, shape index: {}]   ;;  %s282_s1 = inlined_call_operand.vmem [shape: f32[1,256], index: 1, kind: input, shape index: {}]   ;;  %s283_s2 = inlined_call_operand.vmem [shape: f32[1,256], index: 2, kind: input, shape index: {}]   ;;  %s284_s3 = inlined_call_operand.hbm [shape: f32[16,256], index: 3, kind: output, shape index: {0}]   ;;  %s285_s4 = inlined_call_operand.hbm [shape: f32[16,256], index: 4, kind: output, shape index: {1}]  }
   0x1   :  { %11 = vsyncpa [#allocation4], 0 }
   0x2   :  { %12 = vsyncpa [#allocation7], 0  ;;  %s186_s15 = smov [#allocation2]   ;;  %s114_s19 = scalar_lea.hbm %s281_s0, 512 }
   0x3   :  { %s18_s16 = sshll.u32 %s186_s15, 4  ;;  %p115_p0 = scmp.ne.s32.totalorder %s281_s0, %s114_s19  ;;  %s19_s16 = int_to_ptr.vmem [resolvable:$true] %s18_s16 }
   0x4   :  { %p118_p1 = scmp.lt.u32.totalorder %s114_s19, %s281_s0 }
   0x6   :  { %p120_p2 = pnand %p118_p1, %p115_p0 }
   0x8   :  { %123 = shalt.err (!%p120_p2)
}
   0x9   :  { %s124_s24 = scalar_lea.vmem %s19_s16, 512  ;;  %p129_p4 = scmp.lt.s32.totalorder %s19_s16, %s19_s16 }
   0xa   :  { %p125_p3 = scmp.ne.s32.totalorder %s19_s16, %s124_s24  ;;  %p130_p5 = scmp.lt.s32.totalorder %s124_s24, %s124_s24 }
   0xc   :  { %p131_p6 = por %p130_p5, %p129_p4 }
   0xe   :  { %p132_p7 = pnand %p131_p6, %p125_p3 }
  0x10   :  { %135 = shalt.err (!%p132_p7)
}
  0x11   :  { %s187_s25 = smov 256   ;;  %s188_s26 = smov 16  }
  0x12   :  { %24 = dma.hbm_to_vmem [thread:$0]  %s281_s0, 512, %s19_s16, [#allocation3], %s187_s25, %s187_s25, %s188_s26  }
  0x13   :  { %180 = dma.done.wait [#allocation3], 512  }
  0x14   :  { %181 = vsyncadd [#allocation3], 4294966784  ;;  %v38_v0 = vlaneseq  ;;  %v32_v4 = vld [vmem:[#allocation2] sm:$0xff]  ;;  %v33_v6 = vld [vmem:[#allocation2 + $0x8] sm:$0xff]  ;;  %s189_s5 = smov [#allocation5]   ;;  %s190_s8 = smov [#allocation6]  }
  0x15   :  { %v36_v5 = vld [vmem:[%s282_s1] sm:$0x3]  ;;  %s81_s6 = sshll.u32 %s189_s5, 4  ;;  %v34_v9 = vld [vmem:[#allocation2 + $0x10] sm:$0xff]  ;;  %v35_v10 = vld [vmem:[#allocation2 + $0x18] sm:$0xff]  ;;  %s93_s9 = sshll.u32 %s190_s8, 4  ;;  %s237_s6 = int_to_ptr.vmem [resolvable:$true] %s81_s6  ;;  %s239_s9 = int_to_ptr.vmem [resolvable:$true] %s93_s9 }
  0x16   :  { %v39_v1 = vshrl.u32 %v38_v0, 7  ;;  %v56_v11 = vld [vmem:[%s283_s2] sm:$0x3]  ;;  %s136_s1 = scalar_lea.vmem %s237_s6, 512  ;;  %p141_p9 = scmp.lt.s32.totalorder %s237_s6, %s237_s6 }
  0x17   :  { %p137_p8 = scmp.ne.s32.totalorder %s237_s6, %s136_s1  ;;  %p142_p10 = scmp.lt.s32.totalorder %s136_s1, %s136_s1 }
  0x18   :  { %v40_v2 = vsub.s32 0, %v39_v1  ;;  %v44_v3 = vsub.s32 1, %v39_v1 }
  0x19   :  { %p143_p11 = por %p142_p10, %p141_p9 }
  0x1a   :  { %v41_v7 = vrot.slane %v36_v5, %v40_v2  ;;  %v45_v8 = vrot.slane %v36_v5, %v44_v3  ;;  %v61_v12 = vrot.slane %v56_v11, %v40_v2  ;;  %v65_v13 = vrot.slane %v56_v11, %v44_v3 }
  0x1b   :  { %p144_p12 = pnand %p143_p11, %p137_p8 }
  0x1c   :  { %v48_v14 = vmul.f32 %v41_v7, %v32_v4  ;;  %v49_v15 = vmul.f32 %v45_v8, %v33_v6  ;;  %v50_v16 = vmul.f32 %v41_v7, %v34_v9  ;;  %v51_v17 = vmul.f32 %v45_v8, %v35_v10 }
  0x1d   :  { %v68_v18 = vmul.f32 %v61_v12, %v32_v4  ;;  %v69_v19 = vmul.f32 %v65_v13, %v33_v6  ;;  %v70_v20 = vmul.f32 %v61_v12, %v34_v9  ;;  %v71_v21 = vmul.f32 %v65_v13, %v35_v10 }
  0x1e   :  { %52 = vst [vmem:[#allocation5] sm:$0xff] %v48_v14  ;;  %53 = vst [vmem:[#allocation5 + $0x8] sm:$0xff] %v49_v15 }
  0x1f   :  { %54 = vst [vmem:[#allocation5 + $0x10] sm:$0xff] %v50_v16  ;;  %55 = vst [vmem:[#allocation5 + $0x18] sm:$0xff] %v51_v17 }
  0x20   :  { %72 = vst [vmem:[#allocation6] sm:$0xff] %v68_v18  ;;  %73 = vst [vmem:[#allocation6 + $0x8] sm:$0xff] %v69_v19 }
  0x21   :  { %74 = vst [vmem:[#allocation6 + $0x10] sm:$0xff] %v70_v20  ;;  %75 = vst [vmem:[#allocation6 + $0x18] sm:$0xff] %v71_v21 }
  0x22   :  { %147 = shalt.err (!%p144_p12)
}
  0x23   :  { %s148_s11 = scalar_lea.hbm %s284_s3, 512 }
  0x24   :  { %p149_p13 = scmp.ne.s32.totalorder %s284_s3, %s148_s11  ;;  %p152_p0 = scmp.lt.u32.totalorder %s148_s11, %s284_s3 }
  0x26   :  { %p154_p1 = pnand %p152_p0, %p149_p13 }
  0x28   :  { %157 = shalt.err (!%p154_p1)
}
  0x29   :  { %87 = dma.vmem_to_hbm [thread:$0]  %s237_s6, 512, %s284_s3, [#allocation4], %s187_s25, %s187_s25, %s188_s26  }
  0x2a   :  { %s158_s18 = scalar_lea.vmem %s239_s9, 512  ;;  %p163_p3 = scmp.lt.s32.totalorder %s239_s9, %s239_s9 }
  0x2b   :  { %p159_p2 = scmp.ne.s32.totalorder %s239_s9, %s158_s18  ;;  %p164_p4 = scmp.lt.s32.totalorder %s158_s18, %s158_s18 }
  0x2d   :  { %p165_p5 = por %p164_p4, %p163_p3 }
  0x2f   :  { %p166_p6 = pnand %p165_p5, %p159_p2 }
  0x31   :  { %169 = shalt.err (!%p166_p6)
}
  0x32   :  { %s170_s21 = scalar_lea.hbm %s285_s4, 512 }
  0x33   :  { %p171_p7 = scmp.ne.s32.totalorder %s285_s4, %s170_s21  ;;  %p174_p8 = scmp.lt.u32.totalorder %s170_s21, %s285_s4 }
  0x35   :  { %p176_p9 = pnand %p174_p8, %p171_p7 }
  0x37   :  { %179 = shalt.err (!%p176_p9)
}
  0x38   :  { %99 = dma.vmem_to_hbm [thread:$0]  %s239_s9, 512, %s285_s4, [#allocation7], %s187_s25, %s187_s25, %s188_s26  }
  0x39   :  { %182 = dma.done.wait [#allocation4], 512  }
  0x3a   :  { %183 = vsyncadd [#allocation4], 4294966784 }
  0x3b   :  { %184 = dma.done.wait [#allocation7], 512  }
  0x3c   :  { %185 = vsyncadd [#allocation7], 4294966784 }
  0x3d   :  { %106 = vsyncpa [#allocation3], 1 }
  0x3e   :  { %107 = vsyncpa [#allocation4], 1 }
  0x3f   :  { %108 = vsyncpa [#allocation7], 1 }

</bundles_post_ra>
